<compile_context>
chip_gen: v7x
topology: tpu7x:2x2x1
jax: 0.10.0
libtpu: 0.0.40
codegen_flags: <defaults>
</compile_context>

<pallas_src>
import math

import jax
import jax.numpy as jnp
from jax.experimental import pallas as pl
from jax.experimental.pallas import tpu as pltpu


def _tpu_kind():
    try:
        return jax.devices()[0].device_kind.lower()
    except Exception:
        return ""


# ----------------------------- Pallas kernel ---------------------------------
def _gemm_bias_relu_kernel(lhs_ref, w_ref, b_ref, o_ref):
    # lhs_ref: (tms, Kg)   w_ref: (Kg, N)   b_ref: (1, N) f32   o_ref: (tms, N)
    acc = jnp.dot(lhs_ref[...], w_ref[...], preferred_element_type=jnp.float32)
    acc = jnp.maximum(acc + b_ref[...], 0.0)          # fused bias + ReLU, f32 accumulation
    o_ref[...] = acc.astype(o_ref.dtype)


def conv2d_relu_pallas(x_nchw, w_hwio, b, *, stride=2, padding=1,
                       tm_max=32768, compute_dtype=jnp.bfloat16, out_dtype=None):
    """Conv2d(KHxKW, stride, padding) + bias + ReLU as a lane-dense Pallas GEMM.

    x: (B, Cin, H, W).  Returns (B, Ho, Wo, Cout) in `out_dtype` (default: compute dtype).
    """
    B, Cin, H, W = x_nchw.shape
    KH, KW, _, Cout = w_hwio.shape
    Ho = (H + 2 * padding - KH) // stride + 1
    Wo = (W + 2 * padding - KW) // stride + 1
    M = B * Ho * Wo
    K = KH * KW * Cin
    Kp = ((K + 31) // 32) * 32                              # zero-pad contraction dim (27 -> 32)

    cdt = jnp.dtype(compute_dtype) if compute_dtype is not None else jnp.dtype(x_nchw.dtype)
    odt = jnp.dtype(out_dtype) if out_dtype is not None else cdt

    kind = _tpu_kind()
    is_v7x = "v7" in kind
    is_v5 = "v5" in kind

    # --- glue: im2col straight from NCHW (no separate transpose pass), already cast to the
    #     compute dtype so the dominant materialized stream is half-width when cdt is bf16 ---
    xc = x_nchw.astype(cdt)
    xp = jnp.pad(xc, ((0, 0), (0, 0), (padding, padding), (padding, padding)))
    cols = []
    for kh in range(KH):
        for kw in range(KW):
            cols.append(xp[:, :, kh:kh + stride * Ho:stride, kw:kw + stride * Wo:stride])
    patches = jnp.stack(cols, axis=-1)                      # (B, Cin, Ho, Wo, KH*KW)
    patches = jnp.transpose(patches, (0, 2, 3, 4, 1)).reshape(M, K)   # K order = (kh, kw, ci)
    wmat = w_hwio.reshape(K, Cout).astype(cdt)
    if Kp != K:
        patches = jnp.pad(patches, ((0, 0), (0, Kp - K)))   # zero cols: numerically free
        wmat = jnp.pad(wmat, ((0, Kp - K), (0, 0)))
    bias = b.reshape(1, Cout).astype(jnp.float32)

    # --- pack g patch rows per GEMM row so LHS K and the output are 128/256-lane dense ---
    lane = 128 if is_v5 else 256                            # match MXU tile / unmasked-vst width
    g = lane // math.gcd(lane, Cout)
    if g > 16:
        g = 1   # TODO(synk): pathological Cout; pad Cout up to a lane multiple instead
    Mp = ((M + g - 1) // g) * g
    if Mp != M:
        patches = jnp.pad(patches, ((0, Mp - M), (0, 0)))   # pad M: avoids masked g=1 fallback
    Ms, Kg, N = Mp // g, g * Kp, g * Cout
    if g > 1:
        lhs = patches.reshape(Ms, Kg)                       # free row-major reshape
        wbig = jnp.zeros((Kg, N), wmat.dtype)
        for j in range(g):                                  # small block-diagonal resident weight
            wbig = wbig.at[j * Kp:(j + 1) * Kp, j * Cout:(j + 1) * Cout].set(wmat)
        bbig = jnp.tile(bias, (1, g))
    else:
        lhs, wbig, bbig = patches, wmat, bias

    # --- row tile: sublane-packed multiple (8 f32 / 16 bf16), multi-MiB per grid step ---
    sub = {1: 32, 2: 16, 4: 8}.get(cdt.itemsize, 8)
    tms = min(Ms, max(sub, (max(tm_max // g, sub) // sub) * sub))
    if tms >= sub:
        tms = (tms // sub) * sub                            # ragged tail handled by cdiv grid
    if is_v7x and Ms >= 4 * sub:                            # only the 2-TC chip gains from splitting
        tms = min(tms, max(sub, (Ms // 4) // sub * sub))    # >=4 steps -> both cores pipelined
    grid_m = pl.cdiv(Ms, tms)                               # no HBM padding of Ms needed

    lhs_item = cdt.itemsize
    out_item = odt.itemsize
    vmem_need = (2 * tms * Kg * lhs_item                    # double-buffered LHS tiles
                 + 2 * Kg * N * lhs_item + 2 * N * 4        # resident weights + bias
                 + 2 * tms * N * out_item)                  # double-buffered output tiles
    vmem_cap = (48 << 20) if is_v7x else (100 << 20)        # v7x: 64 MiB VMEM/TC -> leave headroom
    compiler_params = pltpu.CompilerParams(
        dimension_semantics=("parallel",),
        vmem_limit_bytes=int(min(vmem_cap, max(32 << 20, vmem_need + (8 << 20)))),
    )
    cost = pl.CostEstimate(                                 # useful work only (no block-diag padding)
        flops=2 * M * K * Cout,
        transcendentals=0,
        bytes_accessed=int(Mp * Kp * lhs_item + Kg * N * lhs_item + N * 4
                           + Mp * Cout * out_item),
    )

    out = pl.pallas_call(
        _gemm_bias_relu_kernel,
        out_shape=jax.ShapeDtypeStruct((Ms, N), odt),
        grid=(grid_m,),
        in_specs=[
            pl.BlockSpec((tms, Kg), lambda i: (i, 0)),      # streamed LHS tiles
            pl.BlockSpec((Kg, N), lambda i: (0, 0)),        # resident weights
            pl.BlockSpec((1, N), lambda i: (0, 0)),         # resident bias
        ],
        out_specs=pl.BlockSpec((tms, N), lambda i: (i, 0)),
        compiler_params=compiler_params,
        cost_estimate=cost,
    )(lhs, wbig, bbig)

    out = out.reshape(Mp, Cout)                             # free: flat order is (m, cout)
    if Mp != M:
        out = out[:M]
    return out.reshape(B, Ho, Wo, Cout)


# --------------------------- module wrapper -----------------------------------
class ExpertTransformerPallas:
    """forward(images): NCHW images -> (B, H'*W', encoder_size) visual features.

    Only the submodules exercised by ExpertTransformer.forward(images) are materialized;
    the embedding/attention/decoder parameters built in __init__ are never used by
    forward(images) and are therefore omitted here.
    """

    def __init__(self, key, in_channels=3, encoder_size=32,
                 compute_dtype=jnp.bfloat16, out_dtype=jnp.float32):
        kw, _ = jax.random.split(key)
        fan_in = 3 * 3 * in_channels
        # deterministic stand-in backbone stem (see TODO(synk) above)
        self.conv_w = (jax.random.normal(kw, (3, 3, in_channels, encoder_size), jnp.float32)
                       / jnp.sqrt(jnp.float32(fan_in)))
        self.conv_b = jnp.zeros((encoder_size,), jnp.float32)
        self.compute_dtype = compute_dtype   # bf16 default on all gens: backbone is frozen
        self.out_dtype = out_dtype           # pass jnp.bfloat16 if the downstream transformer
                                             # consumes bf16 (halves the kernel's output stream)

    def __call__(self, images_nchw):
        vf = conv2d_relu_pallas(images_nchw, self.conv_w, self.conv_b,
                                stride=2, padding=1,
                                compute_dtype=self.compute_dtype,
                                out_dtype=self.out_dtype)            # (B, Ho, Wo, C)
        B, Ho, Wo, C = vf.shape
        # PyTorch: vf(NCHW).view(B, C, -1).transpose(-2, -1)  == NHWC reshape (B, Ho*Wo, C)
        return vf.reshape(B, Ho * Wo, C)


# ------------------------------- main ------------------------------------------
if __name__ == "__main__":
    key = jax.random.PRNGKey(0)
    k_img, k_par = jax.random.split(key)

    B, Cin, H, W = 2, 3, 16, 16
    encoder_size = 32
    images = jax.random.normal(k_img, (B, Cin, H, W), jnp.float32)
    x_nhwc = jnp.transpose(images, (0, 2, 3, 1))

    # f32 path (tight check against XLA's reference conv)
    model_f32 = ExpertTransformerPallas(k_par, in_channels=Cin, encoder_size=encoder_size,
                                        compute_dtype=None, out_dtype=jnp.float32)
    out_f32 = jax.block_until_ready(jax.jit(model_f32.__call__)(images))
    assert out_f32.shape == (B, (H // 2) * (W // 2), encoder_size), out_f32.shape

    ref = jax.lax.conv_general_dilated(
        x_nhwc, model_f32.conv_w, window_strides=(2, 2), padding=((1, 1), (1, 1)),
        dimension_numbers=("NHWC", "HWIO", "NHWC"))
    ref = jnp.maximum(ref + model_f32.conv_b, 0.0).reshape(B, -1, encoder_size)
    assert jnp.allclose(out_f32, ref, atol=1e-4, rtol=1e-4), \
        float(jnp.max(jnp.abs(out_f32 - ref)))

    # default path: bf16 compute on every generation (input cast before im2col), f32 output
    model = ExpertTransformerPallas(k_par, in_channels=Cin, encoder_size=encoder_size)
    out = jax.block_until_ready(jax.jit(model.__call__)(images))
    assert out.dtype == jnp.float32 and out.shape == ref.shape
    assert jnp.allclose(out, ref, atol=5e-2, rtol=5e-2), \
        float(jnp.max(jnp.abs(out - ref)))

    print("KERNEL_OK")
</pallas_src>

<mosaic_0001>
module attributes {stable_mosaic.version = 11 : i64} {
  func.func @_gemm_bias_relu_kernel(%arg0: i32, %arg1: memref<16x256xf32, #tpu.memory_space<vmem>>, %arg2: memref<256x256xf32, #tpu.memory_space<vmem>>, %arg3: memref<1x256xf32, #tpu.memory_space<vmem>>, %arg4: memref<16x256xf32, #tpu.memory_space<vmem>>) attributes {dimension_semantics = [#tpu.dimension_semantics<parallel>], iteration_bounds = array<i64: 1>, scalar_prefetch = 0 : i64, scratch_operands = 0 : i64, tpu.core_type = #tpu.core_type<tc>, window_params = [{transform_indices = @transform_0, window_bounds = array<i64: 16, 256>}, {pipeline_mode = #tpu.pipeline_mode<synchronous>, transform_indices = @transform_1, window_bounds = array<i64: 256, 256>}, {pipeline_mode = #tpu.pipeline_mode<synchronous>, transform_indices = @transform_2, window_bounds = array<i64: 1, 256>}, {transform_indices = @transform_3, window_bounds = array<i64: 16, 256>}]} {
    %c0 = arith.constant 0 : index
    %c0_0 = arith.constant 0 : index
    %0 = vector.load %arg1[%c0, %c0_0] : memref<16x256xf32, #tpu.memory_space<vmem>>, vector<16x256xf32>
    %c0_1 = arith.constant 0 : index
    %c0_2 = arith.constant 0 : index
    %1 = vector.load %arg2[%c0_1, %c0_2] : memref<256x256xf32, #tpu.memory_space<vmem>>, vector<256x256xf32>
    %cst = arith.constant dense<0.000000e+00> : vector<16x256xf32>
    %2 = tpu.matmul %0, %1, %cst {dimension_numbers = #tpu.dot_dimension_numbers<[1], [0], [0], [1], [0, 0, 1, 1], [], []>} : vector<16x256xf32>, vector<256x256xf32>, vector<16x256xf32> -> vector<16x256xf32>
    %c0_3 = arith.constant 0 : index
    %c0_4 = arith.constant 0 : index
    %3 = vector.load %arg3[%c0_3, %c0_4] : memref<1x256xf32, #tpu.memory_space<vmem>>, vector<1x256xf32>
    %4 = vector.broadcast %3 : vector<1x256xf32> to vector<16x256xf32>
    %5 = arith.addf %2, %4 : vector<16x256xf32>
    %cst_5 = arith.constant 0.000000e+00 : f32
    %6 = vector.broadcast %cst_5 : f32 to vector<16x256xf32>
    %7 = arith.maximumf %5, %6 : vector<16x256xf32>
    %c0_6 = arith.constant 0 : index
    %c0_7 = arith.constant 0 : index
    %8 = vector.load %arg4[%c0_6, %c0_7] : memref<16x256xf32, #tpu.memory_space<vmem>>, vector<16x256xf32>
    tpu.vector_store %arg4[%c0_6, %c0_7], %7 {strides = array<i32>} : memref<16x256xf32, #tpu.memory_space<vmem>>, vector<16x256xf32>,
    return
  }
  func.func @transform_0(%arg0: i32) -> (i32, i32) {
    %c0_i32 = arith.constant 0 : i32
    %c0_i32_0 = arith.constant 0 : i32
    return %arg0, %c0_i32 : i32, i32
  }
  func.func @transform_1(%arg0: i32) -> (i32, i32) {
    %c0_i32 = arith.constant 0 : i32
    %c0_i32_0 = arith.constant 0 : i32
    %c0_i32_1 = arith.constant 0 : i32
    return %c0_i32, %c0_i32_0 : i32, i32
  }
  func.func @transform_2(%arg0: i32) -> (i32, i32) {
    %c0_i32 = arith.constant 0 : i32
    %c0_i32_0 = arith.constant 0 : i32
    %c0_i32_1 = arith.constant 0 : i32
    return %c0_i32, %c0_i32_0 : i32, i32
  }
  func.func @transform_3(%arg0: i32) -> (i32, i32) {
    %c0_i32 = arith.constant 0 : i32
    %c0_i32_0 = arith.constant 0 : i32
    return %arg0, %c0_i32 : i32, i32
  }
}

</mosaic_0001>

<bundles_post_ra>
// kernel: tile.1
= control target key start
LH: loop header
LB: loop body
LE: loop exit
PB: predicated region body
PF: predicated region fallthrough
CT: control target
= control target key end

     0   :  { %s26_s0 = inlined_call_operand.<no memory space> [shape: f32[], index: 0, kind: input, shape index: {}]   ;;  %s27_s1 = inlined_call_operand.vmem [shape: f32[1,256], index: 1, kind: output, shape index: {}]  }
   0x1   :  { %v2_v0 = vstv %s26_s0 }
   0x2   :  { %3 = vst [vmem:[%s27_s1] sm:$0x1] %v2_v0  ;;  %6 = vst [vmem:[%s27_s1 + $0x1] sm:$0x1] %v2_v0 }

// kernel: a_call__.1
= control target key start
LH: loop header
LB: loop body
LE: loop exit
PB: predicated region body
PF: predicated region fallthrough
CT: control target
= control target key end

     0   :  { %s518_s1 = inlined_call_operand.vmem [shape: f32[256,256], index: 1, kind: input, shape index: {}]   ;;  %s519_s0 = inlined_call_operand.vmem [shape: f32[16,256], index: 0, kind: input, shape index: {}]   ;;  %s520_s2 = inlined_call_operand.vmem [shape: f32[1,256], index: 2, kind: input, shape index: {}]   ;;  %s521_s3 = inlined_call_operand.vmem [shape: f32[16,256], index: 3, kind: output, shape index: {}]  }
   0x1   :  { %v19_v0 = vld [vmem:[%s518_s1 + $0x8] sm:$0xff]  ;;  %v21_v1 = vld [vmem:[%s518_s1 + $0x18] sm:$0xff]  ;;  %v18_v2 = vld [vmem:[%s518_s1] sm:$0xff] }
   0x2   :  { %v183_v3 = vpack.c.bf16 %v21_v1, %v19_v0  ;;  %v20_v4 = vld [vmem:[%s518_s1 + $0x10] sm:$0xff]  ;;  %v23_v5 = vld [vmem:[%s518_s1 + $0x28] sm:$0xff]  ;;  %v25_v6 = vld [vmem:[%s518_s1 + $0x38] sm:$0xff] }
   0x3   :  { %v185_v7 = vpack.c.bf16 %v20_v4, %v18_v2  ;;  %v187_v8 = vpack.c.bf16 %v25_v6, %v23_v5  ;;  %v22_v9 = vld [vmem:[%s518_s1 + $0x20] sm:$0xff]  ;;  %v24_v10 = vld [vmem:[%s518_s1 + $0x30] sm:$0xff]  ;;  %v27_v11 = vld [vmem:[%s518_s1 + $0x48] sm:$0xff] }
   0x4   :  { %184 = vmatprep.subr.bf16.mxu0 %v183_v3  ;;  %247 = vmatprep.subr.bf16.mxu1 %v183_v3  ;;  %v29_v12 = vld [vmem:[%s518_s1 + $0x58] sm:$0xff]  ;;  %v189_v13 = vpack.c.bf16 %v24_v10, %v22_v9  ;;  %v26_v15 = vld [vmem:[%s518_s1 + $0x40] sm:$0xff]  ;;  %v28_v16 = vld [vmem:[%s518_s1 + $0x50] sm:$0xff] }
   0x5   :  { %186 = vmatpush1.bf16.msra.mxu0 %v185_v7  ;;  %263 = vmatpush1.bf16.msra.mxu1 %v185_v7  ;;  %v191_v14 = vpack.c.bf16 %v29_v12, %v27_v11  ;;  %v31_v17 = vld [vmem:[%s518_s1 + $0x68] sm:$0xff]  ;;  %v33_v18 = vld [vmem:[%s518_s1 + $0x78] sm:$0xff]  ;;  %v193_v19 = vpack.c.bf16 %v28_v16, %v26_v15  ;;  %v30_v21 = vld [vmem:[%s518_s1 + $0x60] sm:$0xff] }
   0x6   :  { %188 = vmatprep.subr.bf16.mxu0 %v187_v8  ;;  %248 = vmatprep.subr.bf16.mxu1 %v187_v8  ;;  %v195_v20 = vpack.c.bf16 %v33_v18, %v31_v17  ;;  %v32_v22 = vld [vmem:[%s518_s1 + $0x70] sm:$0xff]  ;;  %v35_v23 = vld [vmem:[%s518_s1 + $0x88] sm:$0xff]  ;;  %v37_v24 = vld [vmem:[%s518_s1 + $0x98] sm:$0xff] }
   0x7   :  { %v197_v25 = vpack.c.bf16 %v32_v22, %v30_v21  ;;  %v199_v26 = vpack.c.bf16 %v37_v24, %v35_v23  ;;  %v34_v27 = vld [vmem:[%s518_s1 + $0x80] sm:$0xff]  ;;  %v36_v28 = vld [vmem:[%s518_s1 + $0x90] sm:$0xff]  ;;  %v39_v29 = vld [vmem:[%s518_s1 + $0xa8] sm:$0xff] }
   0x8   :  { %v41_v30 = vld [vmem:[%s518_s1 + $0xb8] sm:$0xff]  ;;  %v201_v31 = vpack.c.bf16 %v36_v28, %v34_v27  ;;  %v38_v33 = vld [vmem:[%s518_s1 + $0xa0] sm:$0xff]  ;;  %v40_v34 = vld [vmem:[%s518_s1 + $0xb0] sm:$0xff] }
   0x9   :  { %190 = vmatpush1.bf16.msra.mxu0 %v189_v13  ;;  %264 = vmatpush1.bf16.msra.mxu1 %v189_v13  ;;  %v203_v32 = vpack.c.bf16 %v41_v30, %v39_v29  ;;  %v43_v35 = vld [vmem:[%s518_s1 + $0xc8] sm:$0xff]  ;;  %v45_v36 = vld [vmem:[%s518_s1 + $0xd8] sm:$0xff]  ;;  %v205_v37 = vpack.c.bf16 %v40_v34, %v38_v33  ;;  %v42_v38 = vld [vmem:[%s518_s1 + $0xc0] sm:$0xff] }
   0xa   :  { %192 = vmatprep.subr.bf16.mxu0 %v191_v14  ;;  %249 = vmatprep.subr.bf16.mxu1 %v191_v14  ;;  %v207_v39 = vpack.c.bf16 %v45_v36, %v43_v35  ;;  %v44_v40 = vld [vmem:[%s518_s1 + $0xd0] sm:$0xff]  ;;  %v15_v41 = vld [vmem:[%s519_s0 + $0x8] sm:$0xff]  ;;  %v17_v42 = vld [vmem:[%s519_s0 + $0x18] sm:$0xff]  ;;  %v84_v36 = vlaneseq }
   0xb   :  { %v47_v43 = vld [vmem:[%s518_s1 + $0xe8] sm:$0xff]  ;;  %v49_v44 = vld [vmem:[%s518_s1 + $0xf8] sm:$0xff]  ;;  %158 = vmatprep.mubr.f32.mxu0 %v15_v41  ;;  %164 = vmatprep.mubr.f32.mxu1 %v17_v42  ;;  %v209_v45 = vpack.c.bf16 %v44_v40, %v42_v38  ;;  %v46_v47 = vld [vmem:[%s518_s1 + $0xe0] sm:$0xff] }
   0xc   :  { %v211_v46 = vpack.c.bf16 %v49_v44, %v47_v43  ;;  %v48_v48 = vld [vmem:[%s518_s1 + $0xf0] sm:$0xff]  ;;  %v51_v49 = vld [vmem:[%s518_s1 + $0x108] sm:$0xff]  ;;  %v53_v50 = vld [vmem:[%s518_s1 + $0x118] sm:$0xff] }
   0xd   :  { %194 = vmatpush1.bf16.msra.mxu0 %v193_v19  ;;  %265 = vmatpush1.bf16.msra.mxu1 %v193_v19  ;;  %v213_v51 = vpack.c.bf16 %v48_v48, %v46_v47  ;;  %v215_v52 = vpack.c.bf16 %v53_v50, %v51_v49  ;;  %v50_v53 = vld [vmem:[%s518_s1 + $0x100] sm:$0xff]  ;;  %v52_v54 = vld [vmem:[%s518_s1 + $0x110] sm:$0xff]  ;;  %v55_v55 = vld [vmem:[%s518_s1 + $0x128] sm:$0xff] }
   0xe   :  { %196 = vmatprep.subr.bf16.mxu0 %v195_v20  ;;  %250 = vmatprep.subr.bf16.mxu1 %v195_v20  ;;  %v57_v56 = vld [vmem:[%s518_s1 + $0x138] sm:$0xff]  ;;  %v217_v57 = vpack.c.bf16 %v52_v54, %v50_v53  ;;  %v54_v59 = vld [vmem:[%s518_s1 + $0x120] sm:$0xff]  ;;  %v56_v60 = vld [vmem:[%s518_s1 + $0x130] sm:$0xff] }
   0xf   :  { %v219_v58 = vpack.c.bf16 %v57_v56, %v55_v55  ;;  %v59_v61 = vld [vmem:[%s518_s1 + $0x148] sm:$0xff]  ;;  %v61_v62 = vld [vmem:[%s518_s1 + $0x158] sm:$0xff]  ;;  %v221_v63 = vpack.c.bf16 %v56_v60, %v54_v59  ;;  %v58_v1 = vld [vmem:[%s518_s1 + $0x140] sm:$0xff] }
  0x10   :  { %v223_v0 = vpack.c.bf16 %v61_v62, %v59_v61  ;;  %v60_v2 = vld [vmem:[%s518_s1 + $0x150] sm:$0xff]  ;;  %v63_v3 = vld [vmem:[%s518_s1 + $0x168] sm:$0xff]  ;;  %v65_v4 = vld [vmem:[%s518_s1 + $0x178] sm:$0xff] }
  0x11   :  { %198 = vmatpush1.bf16.msra.mxu0 %v197_v25  ;;  %266 = vmatpush1.bf16.msra.mxu1 %v197_v25  ;;  %v225_v5 = vpack.c.bf16 %v60_v2, %v58_v1  ;;  %v227_v6 = vpack.c.bf16 %v65_v4, %v63_v3  ;;  %v62_v7 = vld [vmem:[%s518_s1 + $0x160] sm:$0xff]  ;;  %v64_v8 = vld [vmem:[%s518_s1 + $0x170] sm:$0xff]  ;;  %v67_v9 = vld [vmem:[%s518_s1 + $0x188] sm:$0xff] }
  0x12   :  { %200 = vmatprep.subr.bf16.mxu0 %v199_v26  ;;  %251 = vmatprep.subr.bf16.mxu1 %v199_v26  ;;  %v69_v10 = vld [vmem:[%s518_s1 + $0x198] sm:$0xff]  ;;  %v229_v11 = vpack.c.bf16 %v64_v8, %v62_v7  ;;  %v66_v13 = vld [vmem:[%s518_s1 + $0x180] sm:$0xff]  ;;  %v68_v14 = vld [vmem:[%s518_s1 + $0x190] sm:$0xff] }
  0x13   :  { %v231_v12 = vpack.c.bf16 %v69_v10, %v67_v9  ;;  %v71_v15 = vld [vmem:[%s518_s1 + $0x1a8] sm:$0xff]  ;;  %v73_v16 = vld [vmem:[%s518_s1 + $0x1b8] sm:$0xff]  ;;  %v233_v17 = vpack.c.bf16 %v68_v14, %v66_v13  ;;  %v70_v19 = vld [vmem:[%s518_s1 + $0x1a0] sm:$0xff] }
  0x14   :  { %v235_v18 = vpack.c.bf16 %v73_v16, %v71_v15  ;;  %v72_v20 = vld [vmem:[%s518_s1 + $0x1b0] sm:$0xff]  ;;  %v75_v21 = vld [vmem:[%s518_s1 + $0x1c8] sm:$0xff]  ;;  %v77_v22 = vld [vmem:[%s518_s1 + $0x1d8] sm:$0xff] }
  0x15   :  { %202 = vmatpush1.bf16.msra.mxu0 %v201_v31  ;;  %267 = vmatpush1.bf16.msra.mxu1 %v201_v31  ;;  %v237_v23 = vpack.c.bf16 %v72_v20, %v70_v19  ;;  %v239_v24 = vpack.c.bf16 %v77_v22, %v75_v21  ;;  %v74_v25 = vld [vmem:[%s518_s1 + $0x1c0] sm:$0xff]  ;;  %v76_v26 = vld [vmem:[%s518_s1 + $0x1d0] sm:$0xff]  ;;  %v79_v27 = vld [vmem:[%s518_s1 + $0x1e8] sm:$0xff] }
  0x16   :  { %204 = vmatprep.subr.bf16.mxu0 %v203_v32  ;;  %252 = vmatprep.subr.bf16.mxu1 %v203_v32  ;;  %v81_v28 = vld [vmem:[%s518_s1 + $0x1f8] sm:$0xff]  ;;  %v241_v29 = vpack.c.bf16 %v76_v26, %v74_v25  ;;  %v78_v31 = vld [vmem:[%s518_s1 + $0x1e0] sm:$0xff]  ;;  %v80_v32 = vld [vmem:[%s518_s1 + $0x1f0] sm:$0xff] }
  0x17   :  { %v243_v30 = vpack.c.bf16 %v81_v28, %v79_v27  ;;  %v245_v33 = vpack.c.bf16 %v80_v32, %v78_v31  ;;  %v14_v34 = vld [vmem:[%s519_s0] sm:$0xff]  ;;  %v16_v35 = vld [vmem:[%s519_s0 + $0x10] sm:$0xff] }
  0x19   :  { %206 = vmatpush1.bf16.msra.mxu0 %v205_v37  ;;  %268 = vmatpush1.bf16.msra.mxu1 %v205_v37  ;;  %v85_v37 = vshrl.u32 %v84_v36, 7 }
  0x1a   :  { %208 = vmatprep.subr.bf16.mxu0 %v207_v39  ;;  %253 = vmatprep.subr.bf16.mxu1 %v207_v39  ;;  %v82_v39 = vld [vmem:[%s520_s2] sm:$0x3] }
  0x1b   :  { %v86_v38 = vsub.s32 0, %v85_v37  ;;  %v90_v40 = vsub.s32 1, %v85_v37 }
  0x1d   :  { %210 = vmatpush1.bf16.msra.mxu0 %v209_v45  ;;  %269 = vmatpush1.bf16.msra.mxu1 %v209_v45  ;;  %v87_v41 = vrot.slane %v82_v39, %v86_v38  ;;  %v91_v42 = vrot.slane %v82_v39, %v90_v40 }
  0x1e   :  { %212 = vmatprep.subr.bf16.mxu0 %v211_v46  ;;  %254 = vmatprep.subr.bf16.mxu1 %v211_v46 }
  0x21   :  { %214 = vmatpush1.bf16.msra.mxu0 %v213_v51  ;;  %270 = vmatpush1.bf16.msra.mxu1 %v213_v51 }
  0x22   :  { %216 = vmatprep.subr.bf16.mxu0 %v215_v52  ;;  %255 = vmatprep.subr.bf16.mxu1 %v215_v52 }
  0x25   :  { %218 = vmatpush1.bf16.msra.mxu0 %v217_v57  ;;  %271 = vmatpush1.bf16.msra.mxu1 %v217_v57 }
  0x26   :  { %220 = vmatprep.subr.bf16.mxu0 %v219_v58  ;;  %256 = vmatprep.subr.bf16.mxu1 %v219_v58 }
  0x29   :  { %222 = vmatpush1.bf16.msra.mxu0 %v221_v63  ;;  %272 = vmatpush1.bf16.msra.mxu1 %v221_v63 }
  0x2a   :  { %224 = vmatprep.subr.bf16.mxu0 %v223_v0  ;;  %257 = vmatprep.subr.bf16.mxu1 %v223_v0 }
  0x2d   :  { %226 = vmatpush1.bf16.msra.mxu0 %v225_v5  ;;  %273 = vmatpush1.bf16.msra.mxu1 %v225_v5 }
  0x2e   :  { %228 = vmatprep.subr.bf16.mxu0 %v227_v6  ;;  %258 = vmatprep.subr.bf16.mxu1 %v227_v6 }
  0x31   :  { %230 = vmatpush1.bf16.msra.mxu0 %v229_v11  ;;  %274 = vmatpush1.bf16.msra.mxu1 %v229_v11 }
  0x32   :  { %232 = vmatprep.subr.bf16.mxu0 %v231_v12  ;;  %259 = vmatprep.subr.bf16.mxu1 %v231_v12 }
  0x35   :  { %234 = vmatpush1.bf16.msra.mxu0 %v233_v17  ;;  %275 = vmatpush1.bf16.msra.mxu1 %v233_v17 }
  0x36   :  { %236 = vmatprep.subr.bf16.mxu0 %v235_v18  ;;  %260 = vmatprep.subr.bf16.mxu1 %v235_v18 }
  0x39   :  { %238 = vmatpush1.bf16.msra.mxu0 %v237_v23  ;;  %276 = vmatpush1.bf16.msra.mxu1 %v237_v23 }
  0x3a   :  { %240 = vmatprep.subr.bf16.mxu0 %v239_v24  ;;  %261 = vmatprep.subr.bf16.mxu1 %v239_v24 }
  0x3d   :  { %242 = vmatpush1.bf16.msra.mxu0 %v241_v29  ;;  %277 = vmatpush1.bf16.msra.mxu1 %v241_v29 }
  0x3e   :  { %244 = vmatprep.subr.bf16.mxu0 %v243_v30  ;;  %262 = vmatprep.subr.bf16.mxu1 %v243_v30 }
  0x41   :  { %246 = vmatpush1.bf16.msra.mxu0 %v245_v33  ;;  %278 = vmatpush1.bf16.msra.mxu1 %v245_v33 }
  0x44   :  { %159 = vmatmul.mubr.f32.vlgmr.msra.gmra.mrb[0].mxu0 %v14_v34  ;;  %165 = vmatmul.mubr.f32.vlgmr.msra.gmra.mrb[0].mxu1 %v16_v35 }
 0x117   :  { %v160_v43 = vpop.f32.mrb[0].mxu0  ;;  %v166_v44 = vpop.f32.mrb[0].mxu1 }
 0x118   :  { %v161_v45 = vadd.f32 %v160_v43, %v87_v41  ;;  %v167_v46 = vadd.f32 %v166_v44, %v87_v41  ;;  %v162_v47 = vpop.f32.mrb[1].mxu0  ;;  %v168_v48 = vpop.f32.mrb[1].mxu1 }
 0x119   :  { %v163_v49 = vadd.f32 %v162_v47, %v91_v42  ;;  %v169_v50 = vadd.f32 %v168_v48, %v91_v42 }
 0x11a   :  { %v171_v51 = vmax.f32 %v161_v45, 0.0  ;;  %v173_v52 = vmax.f32 %v167_v46, 0.0 }
 0x11b   :  { %v172_v53 = vmax.f32 %v163_v49, 0.0  ;;  %v174_v54 = vmax.f32 %v169_v50, 0.0 }
 0x11c   :  { %175 = vst [vmem:[%s521_s3] sm:$0xff] %v171_v51  ;;  %177 = vst [vmem:[%s521_s3 + $0x10] sm:$0xff] %v173_v52 }
 0x11d   :  { %176 = vst [vmem:[%s521_s3 + $0x8] sm:$0xff] %v172_v53  ;;  %178 = vst [vmem:[%s521_s3 + $0x18] sm:$0xff] %v174_v54 }

</bundles_post_ra>
